<compile_context>
chip_gen: v7x
topology: tpu7x:2x2x1
jax: 0.10.0
libtpu: 0.0.40
codegen_flags: <defaults>
</compile_context>

<pallas_src>
import functools

import jax
import jax.numpy as jnp
from jax.experimental import pallas as pl
from jax.experimental.pallas import tpu as pltpu

_VMEM = pl.BlockSpec(memory_space=pltpu.MemorySpace.VMEM)
_SMEM = pl.BlockSpec(memory_space=pltpu.MemorySpace.SMEM)
_F32 = jnp.float32


def _col_to_row(col, n):
    """(n, 1) -> (1, n) via iota/select/sublane-reduce (no transpose relayout)."""
    r = jax.lax.broadcasted_iota(jnp.int32, (n, n), 0)
    c = jax.lax.broadcasted_iota(jnp.int32, (n, n), 1)
    return jnp.sum(jnp.where(r == c, col, 0.0), axis=0, keepdims=True)


def _deeppoly_kernel(eps_ref, x_ref, xc_ref,
                     w1_ref, w1t_ref, b1_ref, alpha_ref,
                     w2_ref, w2t_ref, b2_ref,
                     wv_ref, wvt_ref,
                     out_ref):
    eps = eps_ref[0, 0]

    # ----------------- input box, intersected with [0, 1] ------------------
    x = x_ref[...]                                   # (1, D)  row (lanes = D)
    xc = xc_ref[...]                                 # (D, 1)  column copy
    l0 = jnp.maximum(x - eps, 0.0)
    u0 = jnp.minimum(x + eps, 1.0)
    l0c = jnp.maximum(xc - eps, 0.0)
    u0c = jnp.minimum(xc + eps, 1.0)

    # ----------------- Linear 1: interval propagation ----------------------
    w1t = w1t_ref[...]                               # (D, H) pre-transposed
    w1tp = jnp.maximum(w1t, 0.0)
    w1tn = jnp.minimum(w1t, 0.0)
    b1 = b1_ref[...]                                 # (1, H)
    lb1 = (jnp.dot(l0, w1tp, preferred_element_type=_F32)
           + jnp.dot(u0, w1tn, preferred_element_type=_F32) + b1)
    ub1 = (jnp.dot(u0, w1tp, preferred_element_type=_F32)
           + jnp.dot(l0, w1tn, preferred_element_type=_F32) + b1)

    # ----------------- ReLU: DeepPoly relaxation ---------------------------
    alpha = jnp.clip(alpha_ref[...], 0.0, 1.0)       # (1, H)
    lb2 = jnp.maximum(lb1, 0.0)
    ub2 = jnp.maximum(ub1, 0.0)
    is_pos = lb1 >= 0.0
    is_cross = jnp.logical_and(ub1 > 0.0, lb1 < 0.0)
    slope = ub1 / jnp.where(is_cross, ub1 - lb1, 1.0)   # exact divide (soundness)
    lw = jnp.where(is_pos, 1.0, jnp.where(is_cross, alpha, 0.0))
    uw = jnp.where(is_pos, 1.0, jnp.where(is_cross, slope, 0.0))
    ubias = jnp.where(is_cross, slope * (-lb1), 0.0)    # lower relax bias == 0

    # ----------------- backsubstitution #1 (tighten post-ReLU bounds) ------
    # The ReLU constraints are diagonal, so backsubstituting them through
    # Linear1 is a per-column scale of W1^T; the pass through the input
    # constraints + row-sum is a concrete evaluation against the box.
    mu = w1t * uw                                    # (D, H)
    ml = w1t * lw
    ub_bs1 = (jnp.sum(jnp.maximum(mu, 0.0) * u0c + jnp.minimum(mu, 0.0) * l0c,
                      axis=0, keepdims=True) + uw * b1 + ubias)       # (1, H)
    lb_bs1 = (jnp.sum(jnp.maximum(ml, 0.0) * l0c + jnp.minimum(ml, 0.0) * u0c,
                      axis=0, keepdims=True) + lw * b1)
    ub2 = jnp.minimum(ub2, ub_bs1)
    lb2 = jnp.maximum(lb2, lb_bs1)

    # ----------------- Linear 2: interval propagation ----------------------
    w2t = w2t_ref[...]                               # (H, C)
    w2tp = jnp.maximum(w2t, 0.0)
    w2tn = jnp.minimum(w2t, 0.0)
    b2 = b2_ref[...]                                 # (1, C)
    lb3 = (jnp.dot(lb2, w2tp, preferred_element_type=_F32)
           + jnp.dot(ub2, w2tn, preferred_element_type=_F32) + b2)
    ub3 = (jnp.dot(ub2, w2tp, preferred_element_type=_F32)
           + jnp.dot(lb2, w2tn, preferred_element_type=_F32) + b2)

    # ----------------- verification layer: interval lower bound ------------
    wvt = wvt_ref[...]                               # (C, V), zero bias
    wvtp = jnp.maximum(wvt, 0.0)
    wvtn = jnp.minimum(wvt, 0.0)
    lb4 = (jnp.dot(lb3, wvtp, preferred_element_type=_F32)
           + jnp.dot(ub3, wvtn, preferred_element_type=_F32))   # (1, V)
    # (interval upper bound never feeds the returned value -> not computed)

    # ----------------- final deep backsubstitution -------------------------
    # chain: [Wv|0] o [W2|b2] o ReLU-relaxation o [W1|b1] o input box.
    # Constraint bodies are carried as (V, K) rows; biases as (V, 1) columns.
    wv = wv_ref[...]                                 # (V, C)
    w2 = w2_ref[...]                                 # (C, H)
    w1 = w1_ref[...]                                 # (H, D)

    # through Linear2 (upper == lower constraint -> single plain matmul)
    a1 = jnp.dot(wv, w2, preferred_element_type=_F32)            # (V, H)
    bias1 = jnp.sum(wv * b2, axis=1, keepdims=True)              # (V, 1) = Wv @ b2

    # through the ReLU relaxation (diagonal) -> elementwise column scaling.
    # Only the lower-bound arm is needed for the returned value; the module's
    # upper-bound tightening is dead code here and skipped.
    a1p = jnp.maximum(a1, 0.0)
    a1n = jnp.minimum(a1, 0.0)
    al = a1p * lw + a1n * uw                                     # (V, H)
    bias_l = jnp.sum(a1n * ubias, axis=1, keepdims=True) + bias1  # lower bias = 0

    # through Linear1 (upper == lower constraint)
    al1 = jnp.dot(al, w1, preferred_element_type=_F32)           # (V, D)
    bias_l = jnp.sum(al * b1, axis=1, keepdims=True) + bias_l

    # concrete evaluation against the input box (== backsub through the
    # flatten-layer [value | 0] constraints followed by the row sum)
    lb_bs = (jnp.sum(jnp.maximum(al1, 0.0) * l0 + jnp.minimum(al1, 0.0) * u0,
                     axis=1, keepdims=True) + bias_l)            # (V, 1)

    v = out_ref.shape[1]
    out_ref[...] = jnp.maximum(lb4, _col_to_row(lb_bs, v))


# --------------------------------------------------------------------------
# Wrapper (operand prep + pallas_call)
# --------------------------------------------------------------------------
def make_verification_weight(n_classes, true_label):
    # create_verification_layer: y_true - y_other for every other class.
    w = jnp.zeros((n_classes - 1, n_classes), jnp.float32)
    w = w.at[:, true_label].set(1.0)
    for i in range(true_label):
        w = w.at[i, i].set(-1.0)
    for i in range(true_label, n_classes - 1):
        w = w.at[i, i + 1].set(-1.0)
    return w


@functools.partial(jax.jit, static_argnames=("true_label",))
def deeppoly_forward_pallas(inputs, eps, params, *, true_label):
    w1, b1, alpha, w2, b2 = params
    n_classes = w2.shape[0]
    n_out = n_classes - 1
    wv = make_verification_weight(n_classes, true_label)

    x_row = inputs.reshape(1, -1).astype(jnp.float32)   # Flatten layer
    x_col = x_row.reshape(-1, 1)
    eps_arr = jnp.full((1, 1), eps, jnp.float32)

    return pl.pallas_call(
        _deeppoly_kernel,
        out_shape=jax.ShapeDtypeStruct((1, n_out), jnp.float32),
        in_specs=[_SMEM] + [_VMEM] * 11,
        out_specs=_VMEM,
    )(eps_arr,
      x_row, x_col,
      w1, w1.T, b1.reshape(1, -1), alpha.reshape(1, -1),
      w2, w2.T, b2.reshape(1, -1),
      wv, wv.T)


# --------------------------------------------------------------------------
# Pure-JAX reference (mirrors the PyTorch module's math) — correctness check
# --------------------------------------------------------------------------
def _affine_bounds_ref(l, u, w, b):
    wp, wn = jnp.maximum(w, 0.0), jnp.minimum(w, 0.0)
    lb = l @ wp.T + u @ wn.T + b
    ub = u @ wp.T + l @ wn.T + b
    return lb, ub


def _backsub_step_ref(ucur, lcur, uprev, lprev):
    k = uprev.shape[0]
    au, bu = ucur[:, :k], ucur[:, k]
    al, bl = lcur[:, :k], lcur[:, k]
    su = jnp.maximum(au, 0.0) @ uprev + jnp.minimum(au, 0.0) @ lprev
    su = su.at[:, -1].add(bu)
    sl = jnp.maximum(al, 0.0) @ lprev + jnp.minimum(al, 0.0) @ uprev
    sl = sl.at[:, -1].add(bl)
    return su, sl


def deeppoly_forward_ref(inputs, eps, params, true_label):
    w1, b1, alpha, w2, b2 = params
    n_classes = w2.shape[0]

    lbs, ubs, lcons, ucons = [], [], [], []
    l0 = jnp.maximum(inputs - eps, 0.0)
    u0 = jnp.minimum(inputs + eps, 1.0)
    lbs.append(l0); ubs.append(u0)
    lcons.append(l0); ucons.append(u0)

    def backsubstitute():
        uc, lc = ucons[-1], lcons[-1]
        for ucp, lcp in zip(ucons[-2::-1], lcons[-2::-1]):
            uc, lc = _backsub_step_ref(uc, lc, ucp, lcp)
        ubs[-1] = jnp.minimum(ubs[-1], jnp.sum(uc, axis=1))
        lbs[-1] = jnp.maximum(lbs[-1], jnp.sum(lc, axis=1))

    # Flatten at layer 0 (not after a conv): constraints become [value, 0]
    lbs[-1] = lbs[-1].reshape(1, -1)
    ubs[-1] = ubs[-1].reshape(1, -1)
    zeros = jnp.zeros((lbs[-1].shape[1],), jnp.float32)
    lcons[-1] = jnp.stack([lcons[-1].reshape(-1), zeros], axis=1)
    ucons[-1] = jnp.stack([ucons[-1].reshape(-1), zeros], axis=1)

    def process_affine(w, b):
        lb, ub = _affine_bounds_ref(lbs[-1], ubs[-1], w, b)
        lbs.append(lb); ubs.append(ub)
        c = jnp.concatenate([w, b.reshape(-1, 1)], axis=1)
        lcons.append(c); ucons.append(c)

    def process_relu(a):
        a = jnp.clip(a, 0.0, 1.0).reshape(1, -1)
        l, u = lbs[-1], ubs[-1]
        lbs.append(jnp.maximum(l, 0.0)); ubs.append(jnp.maximum(u, 0.0))
        is_pos = l >= 0.0
        is_cross = (u > 0.0) & (l < 0.0)
        slope = u / jnp.where(is_cross, u - l, 1.0)
        lw = jnp.where(is_pos, 1.0, jnp.where(is_cross, a, 0.0)).reshape(-1)
        uw = jnp.where(is_pos, 1.0, jnp.where(is_cross, slope, 0.0)).reshape(-1)
        u_bias = jnp.where(is_cross, slope * (-l), 0.0).reshape(-1, 1)
        l_bias = jnp.zeros_like(u_bias)
        lcons.append(jnp.concatenate([jnp.diag(lw), l_bias], axis=1))
        ucons.append(jnp.concatenate([jnp.diag(uw), u_bias], axis=1))

    process_affine(w1, b1)
    process_relu(alpha)
    backsubstitute()
    process_affine(w2, b2)
    wv = make_verification_weight(n_classes, true_label)
    process_affine(wv, jnp.zeros((n_classes - 1,), jnp.float32))
    backsubstitute()
    return lbs[-1]


# --------------------------------------------------------------------------
if __name__ == "__main__":
    key = jax.random.PRNGKey(0)
    k_in, k_w1, k_b1, k_a, k_w2, k_b2 = jax.random.split(key, 6)

    C, H, W = 1, 8, 8          # synthetic "image" (CHW), flattened to 64 features
    D = C * H * W
    HID = 32
    N_CLASSES = 10
    TRUE_LABEL = 3
    EPS = 0.05

    inputs = jax.random.uniform(k_in, (C, H, W), jnp.float32)
    w1 = jax.random.normal(k_w1, (HID, D), jnp.float32) * (1.0 / jnp.sqrt(D))
    b1 = jax.random.normal(k_b1, (HID,), jnp.float32) * 0.1
    alpha = jax.random.normal(k_a, (HID,), jnp.float32)   # torch.randn-style alphas
    w2 = jax.random.normal(k_w2, (N_CLASSES, HID), jnp.float32) * (1.0 / jnp.sqrt(HID))
    b2 = jax.random.normal(k_b2, (N_CLASSES,), jnp.float32) * 0.1
    params = (w1, b1, alpha, w2, b2)

    out = deeppoly_forward_pallas(inputs, jnp.float32(EPS), params,
                                  true_label=TRUE_LABEL)
    out = jax.block_until_ready(out)

    ref = deeppoly_forward_ref(inputs.reshape(1, -1), jnp.float32(EPS),
                               params, TRUE_LABEL)

    assert out.shape == (1, N_CLASSES - 1), out.shape
    assert bool(jnp.all(jnp.isfinite(out)))
    assert bool(jnp.allclose(out, ref, rtol=2e-3, atol=2e-3)), (out, ref)

    print("KERNEL_OK")
</pallas_src>

<mosaic_0001>
module attributes {stable_mosaic.version = 11 : i64} {
  func.func @_deeppoly_kernel(%arg0: memref<1x1xf32, #tpu.memory_space<smem>>, %arg1: memref<1x64xf32, #tpu.memory_space<vmem>>, %arg2: memref<64x1xf32, #tpu.memory_space<vmem>>, %arg3: memref<32x64xf32, #tpu.memory_space<vmem>>, %arg4: memref<64x32xf32, #tpu.memory_space<vmem>>, %arg5: memref<1x32xf32, #tpu.memory_space<vmem>>, %arg6: memref<1x32xf32, #tpu.memory_space<vmem>>, %arg7: memref<10x32xf32, #tpu.memory_space<vmem>>, %arg8: memref<32x10xf32, #tpu.memory_space<vmem>>, %arg9: memref<1x10xf32, #tpu.memory_space<vmem>>, %arg10: memref<9x10xf32, #tpu.memory_space<vmem>>, %arg11: memref<10x9xf32, #tpu.memory_space<vmem>>, %arg12: memref<1x9xf32, #tpu.memory_space<vmem>>) attributes {dimension_semantics = [], scalar_prefetch = 0 : i64, scratch_operands = 0 : i64, tpu.core_type = #tpu.core_type<tc>} {
    %c0 = arith.constant 0 : index
    %c0_0 = arith.constant 0 : index
    %0 = memref.load %arg0[%c0, %c0_0] : memref<1x1xf32, #tpu.memory_space<smem>>
    %c0_1 = arith.constant 0 : index
    %c0_2 = arith.constant 0 : index
    %1 = vector.load %arg1[%c0_1, %c0_2] : memref<1x64xf32, #tpu.memory_space<vmem>>, vector<1x64xf32>
    %c0_3 = arith.constant 0 : index
    %c0_4 = arith.constant 0 : index
    %2 = vector.load %arg2[%c0_3, %c0_4] : memref<64x1xf32, #tpu.memory_space<vmem>>, vector<64x1xf32>
    %3 = vector.broadcast %0 : f32 to vector<1x64xf32>
    %4 = arith.subf %1, %3 : vector<1x64xf32>
    %cst = arith.constant 0.000000e+00 : f32
    %5 = vector.broadcast %cst : f32 to vector<1x64xf32>
    %6 = arith.maximumf %4, %5 : vector<1x64xf32>
    %7 = vector.broadcast %0 : f32 to vector<1x64xf32>
    %8 = arith.addf %1, %7 : vector<1x64xf32>
    %cst_5 = arith.constant 1.000000e+00 : f32
    %9 = vector.broadcast %cst_5 : f32 to vector<1x64xf32>
    %10 = arith.minimumf %8, %9 : vector<1x64xf32>
    %11 = vector.broadcast %0 : f32 to vector<64x1xf32>
    %12 = arith.subf %2, %11 : vector<64x1xf32>
    %cst_6 = arith.constant 0.000000e+00 : f32
    %13 = vector.broadcast %cst_6 : f32 to vector<64x1xf32>
    %14 = arith.maximumf %12, %13 : vector<64x1xf32>
    %15 = vector.broadcast %0 : f32 to vector<64x1xf32>
    %16 = arith.addf %2, %15 : vector<64x1xf32>
    %cst_7 = arith.constant 1.000000e+00 : f32
    %17 = vector.broadcast %cst_7 : f32 to vector<64x1xf32>
    %18 = arith.minimumf %16, %17 : vector<64x1xf32>
    %c0_8 = arith.constant 0 : index
    %c0_9 = arith.constant 0 : index
    %19 = vector.load %arg4[%c0_8, %c0_9] : memref<64x32xf32, #tpu.memory_space<vmem>>, vector<64x32xf32>
    %cst_10 = arith.constant 0.000000e+00 : f32
    %20 = vector.broadcast %cst_10 : f32 to vector<64x32xf32>
    %21 = arith.maximumf %19, %20 : vector<64x32xf32>
    %cst_11 = arith.constant 0.000000e+00 : f32
    %22 = vector.broadcast %cst_11 : f32 to vector<64x32xf32>
    %23 = arith.minimumf %19, %22 : vector<64x32xf32>
    %c0_12 = arith.constant 0 : index
    %c0_13 = arith.constant 0 : index
    %24 = vector.load %arg5[%c0_12, %c0_13] : memref<1x32xf32, #tpu.memory_space<vmem>>, vector<1x32xf32>
    %cst_14 = arith.constant dense<0.000000e+00> : vector<1x32xf32>
    %25 = tpu.matmul %6, %21, %cst_14 {dimension_numbers = #tpu.dot_dimension_numbers<[1], [0], [0], [1], [0, 0, 1, 1], [], []>} : vector<1x64xf32>, vector<64x32xf32>, vector<1x32xf32> -> vector<1x32xf32>
    %cst_15 = arith.constant dense<0.000000e+00> : vector<1x32xf32>
    %26 = tpu.matmul %10, %23, %cst_15 {dimension_numbers = #tpu.dot_dimension_numbers<[1], [0], [0], [1], [0, 0, 1, 1], [], []>} : vector<1x64xf32>, vector<64x32xf32>, vector<1x32xf32> -> vector<1x32xf32>
    %27 = arith.addf %25, %26 : vector<1x32xf32>
    %28 = arith.addf %27, %24 : vector<1x32xf32>
    %cst_16 = arith.constant dense<0.000000e+00> : vector<1x32xf32>
    %29 = tpu.matmul %10, %21, %cst_16 {dimension_numbers = #tpu.dot_dimension_numbers<[1], [0], [0], [1], [0, 0, 1, 1], [], []>} : vector<1x64xf32>, vector<64x32xf32>, vector<1x32xf32> -> vector<1x32xf32>
    %cst_17 = arith.constant dense<0.000000e+00> : vector<1x32xf32>
    %30 = tpu.matmul %6, %23, %cst_17 {dimension_numbers = #tpu.dot_dimension_numbers<[1], [0], [0], [1], [0, 0, 1, 1], [], []>} : vector<1x64xf32>, vector<64x32xf32>, vector<1x32xf32> -> vector<1x32xf32>
    %31 = arith.addf %29, %30 : vector<1x32xf32>
    %32 = arith.addf %31, %24 : vector<1x32xf32>
    %c0_18 = arith.constant 0 : index
    %c0_19 = arith.constant 0 : index
    %33 = vector.load %arg6[%c0_18, %c0_19] : memref<1x32xf32, #tpu.memory_space<vmem>>, vector<1x32xf32>
    %cst_20 = arith.constant 0.000000e+00 : f32
    %cst_21 = arith.constant 1.000000e+00 : f32
    %34 = vector.broadcast %cst_20 : f32 to vector<1x32xf32>
    %35 = arith.maximumf %34, %33 : vector<1x32xf32>
    %36 = vector.broadcast %cst_21 : f32 to vector<1x32xf32>
    %37 = arith.minimumf %36, %35 : vector<1x32xf32>
    %cst_22 = arith.constant 0.000000e+00 : f32
    %38 = vector.broadcast %cst_22 : f32 to vector<1x32xf32>
    %39 = arith.maximumf %28, %38 : vector<1x32xf32>
    %cst_23 = arith.constant 0.000000e+00 : f32
    %40 = vector.broadcast %cst_23 : f32 to vector<1x32xf32>
    %41 = arith.maximumf %32, %40 : vector<1x32xf32>
    %cst_24 = arith.constant 0.000000e+00 : f32
    %42 = vector.broadcast %cst_24 : f32 to vector<1x32xf32>
    %43 = arith.cmpf oge, %28, %42 : vector<1x32xf32>
    %cst_25 = arith.constant 0.000000e+00 : f32
    %44 = vector.broadcast %cst_25 : f32 to vector<1x32xf32>
    %45 = arith.cmpf ogt, %32, %44 : vector<1x32xf32>
    %cst_26 = arith.constant 0.000000e+00 : f32
    %46 = vector.broadcast %cst_26 : f32 to vector<1x32xf32>
    %47 = arith.cmpf olt, %28, %46 : vector<1x32xf32>
    %48 = arith.andi %45, %47 : vector<1x32xi1>
    %49 = arith.subf %32, %28 : vector<1x32xf32>
    %cst_27 = arith.constant 1.000000e+00 : f32
    %50 = vector.broadcast %cst_27 : f32 to vector<1x32xf32>
    %51 = arith.select %48, %49, %50 : vector<1x32xi1>, vector<1x32xf32>
    %52 = arith.divf %32, %51 : vector<1x32xf32>
    %cst_28 = arith.constant 0.000000e+00 : f32
    %53 = vector.broadcast %cst_28 : f32 to vector<1x32xf32>
    %54 = arith.select %48, %37, %53 : vector<1x32xi1>, vector<1x32xf32>
    %cst_29 = arith.constant 1.000000e+00 : f32
    %55 = vector.broadcast %cst_29 : f32 to vector<1x32xf32>
    %56 = arith.select %43, %55, %54 : vector<1x32xi1>, vector<1x32xf32>
    %cst_30 = arith.constant 0.000000e+00 : f32
    %57 = vector.broadcast %cst_30 : f32 to vector<1x32xf32>
    %58 = arith.select %48, %52, %57 : vector<1x32xi1>, vector<1x32xf32>
    %cst_31 = arith.constant 1.000000e+00 : f32
    %59 = vector.broadcast %cst_31 : f32 to vector<1x32xf32>
    %60 = arith.select %43, %59, %58 : vector<1x32xi1>, vector<1x32xf32>
    %cst_32 = arith.constant 0.000000e+00 : f32
    %61 = vector.broadcast %cst_32 : f32 to vector<1x32xf32>
    %62 = arith.subf %61, %28 : vector<1x32xf32>
    %63 = arith.mulf %52, %62 : vector<1x32xf32>
    %cst_33 = arith.constant 0.000000e+00 : f32
    %64 = vector.broadcast %cst_33 : f32 to vector<1x32xf32>
    %65 = arith.select %48, %63, %64 : vector<1x32xi1>, vector<1x32xf32>
    %66 = vector.broadcast %60 : vector<1x32xf32> to vector<64x32xf32>
    %67 = arith.mulf %19, %66 : vector<64x32xf32>
    %68 = vector.broadcast %56 : vector<1x32xf32> to vector<64x32xf32>
    %69 = arith.mulf %19, %68 : vector<64x32xf32>
    %cst_34 = arith.constant 0.000000e+00 : f32
    %70 = vector.broadcast %cst_34 : f32 to vector<64x32xf32>
    %71 = arith.maximumf %67, %70 : vector<64x32xf32>
    %72 = vector.broadcast %18 : vector<64x1xf32> to vector<64x32xf32>
    %73 = arith.mulf %71, %72 : vector<64x32xf32>
    %cst_35 = arith.constant 0.000000e+00 : f32
    %74 = vector.broadcast %cst_35 : f32 to vector<64x32xf32>
    %75 = arith.minimumf %67, %74 : vector<64x32xf32>
    %76 = vector.broadcast %14 : vector<64x1xf32> to vector<64x32xf32>
    %77 = arith.mulf %75, %76 : vector<64x32xf32>
    %78 = arith.addf %73, %77 : vector<64x32xf32>
    %cst_36 = arith.constant dense<0.000000e+00> : vector<32xf32>
    %79 = vector.multi_reduction <add>, %78, %cst_36 [0] : vector<64x32xf32> to vector<32xf32>
    %80 = vector.shape_cast %79 : vector<32xf32> to vector<1x32xf32>
    %81 = arith.mulf %60, %24 : vector<1x32xf32>
    %82 = arith.addf %80, %81 : vector<1x32xf32>
    %83 = arith.addf %82, %65 : vector<1x32xf32>
    %cst_37 = arith.constant 0.000000e+00 : f32
    %84 = vector.broadcast %cst_37 : f32 to vector<64x32xf32>
    %85 = arith.maximumf %69, %84 : vector<64x32xf32>
    %86 = vector.broadcast %14 : vector<64x1xf32> to vector<64x32xf32>
    %87 = arith.mulf %85, %86 : vector<64x32xf32>
    %cst_38 = arith.constant 0.000000e+00 : f32
    %88 = vector.broadcast %cst_38 : f32 to vector<64x32xf32>
    %89 = arith.minimumf %69, %88 : vector<64x32xf32>
    %90 = vector.broadcast %18 : vector<64x1xf32> to vector<64x32xf32>
    %91 = arith.mulf %89, %90 : vector<64x32xf32>
    %92 = arith.addf %87, %91 : vector<64x32xf32>
    %cst_39 = arith.constant dense<0.000000e+00> : vector<32xf32>
    %93 = vector.multi_reduction <add>, %92, %cst_39 [0] : vector<64x32xf32> to vector<32xf32>
    %94 = vector.shape_cast %93 : vector<32xf32> to vector<1x32xf32>
    %95 = arith.mulf %56, %24 : vector<1x32xf32>
    %96 = arith.addf %94, %95 : vector<1x32xf32>
    %97 = arith.minimumf %41, %83 : vector<1x32xf32>
    %98 = arith.maximumf %39, %96 : vector<1x32xf32>
    %c0_40 = arith.constant 0 : index
    %c0_41 = arith.constant 0 : index
    %99 = vector.load %arg8[%c0_40, %c0_41] : memref<32x10xf32, #tpu.memory_space<vmem>>, vector<32x10xf32>
    %cst_42 = arith.constant 0.000000e+00 : f32
    %100 = vector.broadcast %cst_42 : f32 to vector<32x10xf32>
    %101 = arith.maximumf %99, %100 : vector<32x10xf32>
    %cst_43 = arith.constant 0.000000e+00 : f32
    %102 = vector.broadcast %cst_43 : f32 to vector<32x10xf32>
    %103 = arith.minimumf %99, %102 : vector<32x10xf32>
    %c0_44 = arith.constant 0 : index
    %c0_45 = arith.constant 0 : index
    %104 = vector.load %arg9[%c0_44, %c0_45] : memref<1x10xf32, #tpu.memory_space<vmem>>, vector<1x10xf32>
    %cst_46 = arith.constant dense<0.000000e+00> : vector<1x10xf32>
    %105 = tpu.matmul %98, %101, %cst_46 {dimension_numbers = #tpu.dot_dimension_numbers<[1], [0], [0], [1], [0, 0, 1, 1], [], []>} : vector<1x32xf32>, vector<32x10xf32>, vector<1x10xf32> -> vector<1x10xf32>
    %cst_47 = arith.constant dense<0.000000e+00> : vector<1x10xf32>
    %106 = tpu.matmul %97, %103, %cst_47 {dimension_numbers = #tpu.dot_dimension_numbers<[1], [0], [0], [1], [0, 0, 1, 1], [], []>} : vector<1x32xf32>, vector<32x10xf32>, vector<1x10xf32> -> vector<1x10xf32>
    %107 = arith.addf %105, %106 : vector<1x10xf32>
    %108 = arith.addf %107, %104 : vector<1x10xf32>
    %cst_48 = arith.constant dense<0.000000e+00> : vector<1x10xf32>
    %109 = tpu.matmul %97, %101, %cst_48 {dimension_numbers = #tpu.dot_dimension_numbers<[1], [0], [0], [1], [0, 0, 1, 1], [], []>} : vector<1x32xf32>, vector<32x10xf32>, vector<1x10xf32> -> vector<1x10xf32>
    %cst_49 = arith.constant dense<0.000000e+00> : vector<1x10xf32>
    %110 = tpu.matmul %98, %103, %cst_49 {dimension_numbers = #tpu.dot_dimension_numbers<[1], [0], [0], [1], [0, 0, 1, 1], [], []>} : vector<1x32xf32>, vector<32x10xf32>, vector<1x10xf32> -> vector<1x10xf32>
    %111 = arith.addf %109, %110 : vector<1x10xf32>
    %112 = arith.addf %111, %104 : vector<1x10xf32>
    %c0_50 = arith.constant 0 : index
    %c0_51 = arith.constant 0 : index
    %113 = vector.load %arg11[%c0_50, %c0_51] : memref<10x9xf32, #tpu.memory_space<vmem>>, vector<10x9xf32>
    %cst_52 = arith.constant 0.000000e+00 : f32
    %114 = vector.broadcast %cst_52 : f32 to vector<10x9xf32>
    %115 = arith.maximumf %113, %114 : vector<10x9xf32>
    %cst_53 = arith.constant 0.000000e+00 : f32
    %116 = vector.broadcast %cst_53 : f32 to vector<10x9xf32>
    %117 = arith.minimumf %113, %116 : vector<10x9xf32>
    %cst_54 = arith.constant dense<0.000000e+00> : vector<1x9xf32>
    %118 = tpu.matmul %108, %115, %cst_54 {dimension_numbers = #tpu.dot_dimension_numbers<[1], [0], [0], [1], [0, 0, 1, 1], [], []>} : vector<1x10xf32>, vector<10x9xf32>, vector<1x9xf32> -> vector<1x9xf32>
    %cst_55 = arith.constant dense<0.000000e+00> : vector<1x9xf32>
    %119 = tpu.matmul %112, %117, %cst_55 {dimension_numbers = #tpu.dot_dimension_numbers<[1], [0], [0], [1], [0, 0, 1, 1], [], []>} : vector<1x10xf32>, vector<10x9xf32>, vector<1x9xf32> -> vector<1x9xf32>
    %120 = arith.addf %118, %119 : vector<1x9xf32>
    %c0_56 = arith.constant 0 : index
    %c0_57 = arith.constant 0 : index
    %121 = vector.load %arg10[%c0_56, %c0_57] : memref<9x10xf32, #tpu.memory_space<vmem>>, vector<9x10xf32>
    %c0_58 = arith.constant 0 : index
    %c0_59 = arith.constant 0 : index
    %122 = vector.load %arg7[%c0_58, %c0_59] : memref<10x32xf32, #tpu.memory_space<vmem>>, vector<10x32xf32>
    %c0_60 = arith.constant 0 : index
    %c0_61 = arith.constant 0 : index
    %123 = vector.load %arg3[%c0_60, %c0_61] : memref<32x64xf32, #tpu.memory_space<vmem>>, vector<32x64xf32>
    %cst_62 = arith.constant dense<0.000000e+00> : vector<9x32xf32>
    %124 = tpu.matmul %121, %122, %cst_62 {dimension_numbers = #tpu.dot_dimension_numbers<[1], [0], [0], [1], [0, 0, 1, 1], [], []>} : vector<9x10xf32>, vector<10x32xf32>, vector<9x32xf32> -> vector<9x32xf32>
    %125 = vector.broadcast %104 : vector<1x10xf32> to vector<9x10xf32>
    %126 = arith.mulf %121, %125 : vector<9x10xf32>
    %cst_63 = arith.constant dense<0.000000e+00> : vector<9xf32>
    %127 = vector.multi_reduction <add>, %126, %cst_63 [1] : vector<9x10xf32> to vector<9xf32>
    %128 = vector.shape_cast %127 : vector<9xf32> to vector<9x1xf32>
    %cst_64 = arith.constant 0.000000e+00 : f32
    %129 = vector.broadcast %cst_64 : f32 to vector<9x32xf32>
    %130 = arith.maximumf %124, %129 : vector<9x32xf32>
    %cst_65 = arith.constant 0.000000e+00 : f32
    %131 = vector.broadcast %cst_65 : f32 to vector<9x32xf32>
    %132 = arith.minimumf %124, %131 : vector<9x32xf32>
    %133 = vector.broadcast %56 : vector<1x32xf32> to vector<9x32xf32>
    %134 = arith.mulf %130, %133 : vector<9x32xf32>
    %135 = vector.broadcast %60 : vector<1x32xf32> to vector<9x32xf32>
    %136 = arith.mulf %132, %135 : vector<9x32xf32>
    %137 = arith.addf %134, %136 : vector<9x32xf32>
    %138 = vector.broadcast %65 : vector<1x32xf32> to vector<9x32xf32>
    %139 = arith.mulf %132, %138 : vector<9x32xf32>
    %cst_66 = arith.constant dense<0.000000e+00> : vector<9xf32>
    %140 = vector.multi_reduction <add>, %139, %cst_66 [1] : vector<9x32xf32> to vector<9xf32>
    %141 = vector.shape_cast %140 : vector<9xf32> to vector<9x1xf32>
    %142 = arith.addf %141, %128 : vector<9x1xf32>
    %cst_67 = arith.constant dense<0.000000e+00> : vector<9x64xf32>
    %143 = tpu.matmul %137, %123, %cst_67 {dimension_numbers = #tpu.dot_dimension_numbers<[1], [0], [0], [1], [0, 0, 1, 1], [], []>} : vector<9x32xf32>, vector<32x64xf32>, vector<9x64xf32> -> vector<9x64xf32>
    %144 = vector.broadcast %24 : vector<1x32xf32> to vector<9x32xf32>
    %145 = arith.mulf %137, %144 : vector<9x32xf32>
    %cst_68 = arith.constant dense<0.000000e+00> : vector<9xf32>
    %146 = vector.multi_reduction <add>, %145, %cst_68 [1] : vector<9x32xf32> to vector<9xf32>
    %147 = vector.shape_cast %146 : vector<9xf32> to vector<9x1xf32>
    %148 = arith.addf %147, %142 : vector<9x1xf32>
    %cst_69 = arith.constant 0.000000e+00 : f32
    %149 = vector.broadcast %cst_69 : f32 to vector<9x64xf32>
    %150 = arith.maximumf %143, %149 : vector<9x64xf32>
    %151 = vector.broadcast %6 : vector<1x64xf32> to vector<9x64xf32>
    %152 = arith.mulf %150, %151 : vector<9x64xf32>
    %cst_70 = arith.constant 0.000000e+00 : f32
    %153 = vector.broadcast %cst_70 : f32 to vector<9x64xf32>
    %154 = arith.minimumf %143, %153 : vector<9x64xf32>
    %155 = vector.broadcast %10 : vector<1x64xf32> to vector<9x64xf32>
    %156 = arith.mulf %154, %155 : vector<9x64xf32>
    %157 = arith.addf %152, %156 : vector<9x64xf32>
    %cst_71 = arith.constant dense<0.000000e+00> : vector<9xf32>
    %158 = vector.multi_reduction <add>, %157, %cst_71 [1] : vector<9x64xf32> to vector<9xf32>
    %159 = vector.shape_cast %158 : vector<9xf32> to vector<9x1xf32>
    %160 = arith.addf %159, %148 : vector<9x1xf32>
    %161 = tpu.iota {dimensions = array<i32: 0>} : vector<9x9xi32>
    %162 = tpu.iota {dimensions = array<i32: 1>} : vector<9x9xi32>
    %163 = arith.cmpi eq, %161, %162 : vector<9x9xi32>
    %cst_72 = arith.constant 0.000000e+00 : f32
    %164 = vector.shape_cast %160 : vector<9x1xf32> to vector<9x1xf32>
    %165 = vector.broadcast %164 : vector<9x1xf32> to vector<9x9xf32>
    %166 = vector.broadcast %cst_72 : f32 to vector<9x9xf32>
    %167 = arith.select %163, %165, %166 : vector<9x9xi1>, vector<9x9xf32>
    %cst_73 = arith.constant dense<0.000000e+00> : vector<9xf32>
    %168 = vector.multi_reduction <add>, %167, %cst_73 [0] : vector<9x9xf32> to vector<9xf32>
    %169 = vector.shape_cast %168 : vector<9xf32> to vector<1x9xf32>
    %170 = arith.maximumf %120, %169 : vector<1x9xf32>
    %c0_74 = arith.constant 0 : index
    %c0_75 = arith.constant 0 : index
    %171 = vector.load %arg12[%c0_74, %c0_75] : memref<1x9xf32, #tpu.memory_space<vmem>>, vector<1x9xf32>
    tpu.vector_store %arg12[%c0_74, %c0_75], %170 {strides = array<i32>} : memref<1x9xf32, #tpu.memory_space<vmem>>, vector<1x9xf32>,
    return
  }
}

</mosaic_0001>

<bundles_post_ra>
// kernel: deeppoly_forward_pallas.1
= control target key start
LH: loop header
LB: loop body
LE: loop exit
PB: predicated region body
PF: predicated region fallthrough
CT: control target
= control target key end

     0   :  { %v2352_v3 = vmov 0.0|0.0   ;;  %vm1785_vm0 = vmmov 0   ;;  %v2354_v15 = vmov 0.0   ;;  %s2338_s0 = inlined_call_operand.<no memory space> [shape: f32[1,1], index: 0, kind: input, shape index: {}]   ;;  %s2339_s1 = inlined_call_operand.vmem [shape: f32[1,64], index: 1, kind: input, shape index: {}]   ;;  %s2340_s2 = inlined_call_operand.vmem [shape: f32[64,1], index: 2, kind: input, shape index: {}]   ;;  %s2341_s3 = inlined_call_operand.vmem [shape: f32[32,64], index: 3, kind: input, shape index: {}]   ;;  %s2342_s4 = inlined_call_operand.vmem [shape: f32[64,32], index: 4, kind: input, shape index: {}]   ;;  %s2343_s5 = inlined_call_operand.vmem [shape: f32[1,32], index: 5, kind: input, shape index: {}]   ;;  %s2344_s6 = inlined_call_operand.vmem [shape: f32[1,32], index: 6, kind: input, shape index: {}]   ;;  %s2345_s7 = inlined_call_operand.vmem [shape: f32[10,32], index: 7, kind: input, shape index: {}]   ;;  %s2346_s8 = inlined_call_operand.vmem [shape: f32[32,10], index: 8, kind: input, shape index: {}]   ;;  %s2347_s9 = inlined_call_operand.vmem [shape: f32[1,10], index: 9, kind: input, shape index: {}]   ;;  %s2348_s10 = inlined_call_operand.vmem [shape: f32[9,10], index: 10, kind: input, shape index: {}]   ;;  %s2349_s11 = inlined_call_operand.vmem [shape: f32[10,9], index: 11, kind: input, shape index: {}]   ;;  %s2350_s12 = inlined_call_operand.hbm [shape: f32[1,9], index: 12, kind: output, shape index: {}]  }
   0x1   :  { %v1858_v0 = vld [vmem:[%s2342_s4] sm:$0xff]  ;;  %v1863_v1 = vld [vmem:[%s2342_s4 + $0x8] sm:$0xff]  ;;  %v1868_v2 = vld [vmem:[%s2342_s4 + $0x10] sm:$0xff]  ;;  %1654 = vmatprep.subr.bf16.mxu0 %v2352_v3  ;;  %1666 = vmatprep.subr.bf16.mxu1 %v2352_v3  ;;  %v1934_v28 = vstv %s2338_s0 }
   0x2   :  { %v106_v4 = vmin.f32 %v1858_v0, 0.0  ;;  %v107_v5 = vmin.f32 %v1863_v1, 0.0  ;;  %v98_v6 = vmax.f32 %v1858_v0, 0.0  ;;  %v99_v7 = vmax.f32 %v1863_v1, 0.0  ;;  %v1879_v8 = vld [vmem:[%s2342_s4 + $0x18] sm:$0xff]  ;;  %v1884_v9 = vld [vmem:[%s2342_s4 + $0x20] sm:$0xff]  ;;  %1518 = vmatprep.mubr.msk.f32.mxu0 %vm1785_vm0, %v2354_v15  ;;  %1537 = vmatprep.mubr.msk.f32.mxu1 %vm1785_vm0, %v2354_v15 }
   0x3   :  { %v108_v10 = vmin.f32 %v1868_v2, 0.0  ;;  %v109_v11 = vmin.f32 %v1879_v8, 0.0  ;;  %v100_v12 = vmax.f32 %v1868_v2, 0.0  ;;  %v101_v13 = vmax.f32 %v1879_v8, 0.0  ;;  %v1893_v14 = vld [vmem:[%s2342_s4 + $0x28] sm:$0xff]  ;;  %v1908_v20 = vld [vmem:[%s2342_s4 + $0x30] sm:$0xff] }
   0x4   :  { %v1899_v16 = vpack.c.bf16 %v107_v5, %v106_v4  ;;  %v1901_v17 = vpack.c.bf16 %v99_v7, %v98_v6  ;;  %v110_v18 = vmin.f32 %v1884_v9, 0.0  ;;  %v111_v19 = vmin.f32 %v1893_v14, 0.0  ;;  %v45_v21 = vld [vmem:[%s2340_s2] sm:$0xff]  ;;  %v1924_v26 = vld [vmem:[%s2342_s4 + $0x38] sm:$0xff]  ;;  %v46_v27 = vld [vmem:[%s2340_s2 + $0x8] sm:$0xff] }
   0x5   :  { %v1915_v22 = vpack.c.bf16 %v109_v11, %v108_v10  ;;  %v1917_v23 = vpack.c.bf16 %v101_v13, %v100_v12  ;;  %v102_v24 = vmax.f32 %v1884_v9, 0.0  ;;  %v103_v25 = vmax.f32 %v1893_v14, 0.0 }
   0x6   :  { %1656 = vmatpush3.bf16.msra.mxu0 %v1899_v16  ;;  %1668 = vmatpush3.bf16.msra.mxu1 %v1901_v17 }
   0x7   :  { %1657 = vmatprep.subr.bf16.mxu0 %v2352_v3  ;;  %1669 = vmatprep.subr.bf16.mxu1 %v2352_v3 }
   0x8   :  { %18 = vsyncpa [#allocation4], 0  ;;  %v1936_v29 = vpack.c.bf16 %v111_v19, %v110_v18  ;;  %v112_v30 = vmin.f32 %v1908_v20, 0.0  ;;  %v74_v31 = vadd.f32 %v1934_v28, %v45_v21  ;;  %v113_v32 = vmin.f32 %v1924_v26, 0.0  ;;  %v47_v37 = vld [vmem:[%s2340_s2 + $0x10] sm:$0xff]  ;;  %v48_v51 = vld [vmem:[%s2340_s2 + $0x18] sm:$0xff] }
   0x9   :  { %v104_v33 = vmax.f32 %v1908_v20, 0.0  ;;  %v1787_v34 = vmov 0   ;;  %v58_v35 = vsub.f32 %v45_v21, %v1934_v28  ;;  %v75_v36 = vadd.f32 %v1934_v28, %v46_v27  ;;  %v44_v40 = vld [vmem:[%s2339_s1] sm:$0x1]  ;;  %v50_v62 = vld [vmem:[%s2340_s2 + $0x28] sm:$0xff]  ;;  %v51_v7 = vld [vmem:[%s2340_s2 + $0x30] sm:$0xff] }
   0xa   :  { %1757 = vset.pattern.permute.xlu1 %v1787_v34  ;;  %1756 = vset.pattern.permute.xlu0 %v1787_v34  ;;  %v1949_v38 = vpack.c.bf16 %v103_v25, %v102_v24  ;;  %v105_v39 = vmax.f32 %v1924_v26, 0.0  ;;  %v82_v41 = vmin.f32 %v74_v31, 1.0  ;;  %v59_v42 = vsub.f32 %v46_v27, %v1934_v28  ;;  %v49_v57 = vld [vmem:[%s2340_s2 + $0x20] sm:$0xff] }
   0xb   :  { %1659 = vmatpush3.bf16.msra.mxu0 %v1915_v22  ;;  %1671 = vmatpush3.bf16.msra.mxu1 %v1917_v23  ;;  %v66_v43 = vmax.f32 %v58_v35, 0.0  ;;  %v83_v44 = vmin.f32 %v75_v36, 1.0  ;;  %v76_v45 = vadd.f32 %v1934_v28, %v47_v37  ;;  %v56_v46 = vadd.f32 %v1934_v28, %v44_v40  ;;  %v658_v27 = vld [vmem:[%s2346_s8] sm:$0xff] }
   0xc   :  { %1660 = vmatprep.subr.bf16.mxu0 %v2352_v3  ;;  %1672 = vmatprep.subr.bf16.mxu1 %v2352_v3  ;;  %v54_v47 = vsub.f32 %v44_v40, %v1934_v28  ;;  %v67_v48 = vmax.f32 %v59_v42, 0.0  ;;  %v1664_v49 = vpack.c.bf16 %v113_v32, %v112_v30  ;;  %v1676_v50 = vpack.c.bf16 %v105_v39, %v104_v33  ;;  %v661_v32 = vld [vmem:[%s2346_s8 + $0x18] sm:$0xff] }
   0xd   :  { %458 = vperm.xlu0 %1756, %v82_v41   ;;  %514 = vperm.xlu1 %1757, %v66_v43   ;;  %v84_v52 = vmin.f32 %v76_v45, 1.0  ;;  %v1968_v53 = vmin.f32 %v56_v46, 1.0  ;;  %v60_v55 = vsub.f32 %v47_v37, %v1934_v28  ;;  %v77_v56 = vadd.f32 %v1934_v28, %v48_v51 }
   0xe   :  { %v1970_v54 = vmax.f32 %v54_v47, 0.0  ;;  %vm115_vm1 = vcmask 523264   ;;  %v61_v60 = vsub.f32 %v48_v51, %v1934_v28  ;;  %v78_v61 = vadd.f32 %v1934_v28, %v49_v57 }
   0xf   :  { %1662 = vmatpush3.bf16.msra.mxu0 %v1936_v29  ;;  %1674 = vmatpush3.bf16.msra.mxu1 %v1949_v38  ;;  %2360 = vst [vmem:[#allocation6_spill] sm:$0xff] %v1968_v53  ;;  %v68_v58 = vmax.f32 %v60_v55, 0.0  ;;  %v85_v59 = vmin.f32 %v77_v56, 1.0  ;;  %v62_v5 = vsub.f32 %v49_v57, %v1934_v28  ;;  %v79_v6 = vadd.f32 %v1934_v28, %v50_v62  ;;  %v404_v55 = vld [vmem:[%s2344_s6] sm:$0x1] }
  0x10   :  { %1663 = vmatprep.subr.bf16.mxu0 %v2352_v3  ;;  %1675 = vmatprep.subr.bf16.mxu1 %v2352_v3  ;;  %2361 = vst [vmem:[#allocation7_spill] sm:$0xff] %v1970_v54  ;;  %v69_v63 = vmax.f32 %v61_v60, 0.0  ;;  %v86_v4 = vmin.f32 %v78_v61, 1.0  ;;  %v63_v12 = vsub.f32 %v50_v62, %v1934_v28  ;;  %v80_v13 = vadd.f32 %v1934_v28, %v51_v7  ;;  %v2071_v57 = vld [vmem:[%s2343_s5] sm:$0x1] }
  0x11   :  { %463 = vperm.xlu0 %1756, %v83_v44   ;;  %519 = vperm.xlu1 %1757, %v67_v48   ;;  %v70_v10 = vmax.f32 %v62_v5, 0.0  ;;  %v87_v11 = vmin.f32 %v79_v6, 1.0  ;;  %v64_v19 = vsub.f32 %v51_v7, %v1934_v28  ;;  %v662_v30 = vmax.f32 %v658_v27, 0.0 }
  0x12   :  { %v88_v18 = vmin.f32 %v80_v13, 1.0  ;;  %v666_v34 = vmin.f32 %v658_v27, 0.0  ;;  %v665_v35 = vmax.f32 %v661_v32, 0.0  ;;  %v669_v39 = vmin.f32 %v661_v32, 0.0 }
  0x13   :  { %1665 = vmatpush3.bf16.msra.mxu0 %v1664_v49  ;;  %1677 = vmatpush3.bf16.msra.mxu1 %v1676_v50  ;;  %v2351_v56 = vlaneseq  ;;  %v405_v60 = vmax.f32 %v404_v55, 0.0  ;;  %vm568_vm6 = vcmask 261120   ;;  %vm969_vm7 = vcmask 1041408  }
  0x14   :  { %1678 = vmatprep.subr.bf16.mxu0 %v2352_v3  ;;  %1690 = vmatprep.subr.bf16.mxu1 %v2352_v3  ;;  %vm1788_vm8 = vmmov 1   ;;  %vm965_vm10 = vcmask 80896   ;;  %vm1222_vm11 = vcmask 73728   ;;  %vm1245_vm12 = vcmask 253952  }
  0x15   :  { %468 = vperm.xlu0 %1756, %v84_v52   ;;  %524 = vperm.xlu1 %1757, %v68_v58   ;;  %v2081_v5 = vshrl.u32 %v2351_v56, 7  ;;  %vm2237_vm9 = vmpackc.low %vm969_vm7, %vm1788_vm8  ;;  %vm1371_vm13 = vcmask 516096  }
  0x16   :  { %1519 = vmatmul.mubr.msk.f32.vlgmr.msra.gmra.mrb[0].mxu0 %vm115_vm1, %v1968_v53  ;;  %1538 = vmatmul.mubr.msk.f32.vlgmr.msra.gmra.mrb[0].mxu1 %vm115_vm1, %v1970_v54 }
  0x17   :  { %1680 = vmatpush3.bf16.msra.mxu0 %v1899_v16  ;;  %1692 = vmatpush3.bf16.msra.mxu1 %v1901_v17  ;;  %v52_v16 = vld [vmem:[%s2340_s2 + $0x38] sm:$0xff]  ;;  %v71_v17 = vmax.f32 %v63_v12, 0.0  ;;  %2362 = vst [vmem:[#allocation8_spill] sm:$0xff] %v2081_v5 }
  0x18   :  { %1681 = vmatprep.subr.bf16.mxu0 %v2352_v3  ;;  %1693 = vmatprep.subr.bf16.mxu1 %v2352_v3  ;;  %v81_v21 = vadd.f32 %v1934_v28, %v52_v16  ;;  %v65_v24 = vsub.f32 %v52_v16, %v1934_v28  ;;  %v660_v28 = vld [vmem:[%s2346_s8 + $0x10] sm:$0xff] }
  0x19   :  { %1556 = vmatprep.mubr.msk.f32.mxu0 %vm1785_vm0, %v2354_v15  ;;  %1575 = vmatprep.mubr.msk.f32.mxu1 %vm1785_vm0, %v2354_v15  ;;  %v664_v33 = vmax.f32 %v660_v28, 0.0 }
  0x1a   :  { %473 = vperm.xlu0 %1756, %v85_v59   ;;  %529 = vperm.xlu1 %1757, %v69_v63   ;;  %v73_v25 = vmax.f32 %v65_v24, 0.0 }
  0x1b   :  { %1683 = vmatpush3.bf16.msra.mxu0 %v1915_v22  ;;  %1695 = vmatpush3.bf16.msra.mxu1 %v1917_v23  ;;  %v72_v22 = vmax.f32 %v64_v19, 0.0  ;;  %v89_v23 = vmin.f32 %v81_v21, 1.0  ;;  %v2044_v41 = vpack.c.bf16 %v665_v35, %v664_v33 }
  0x1c   :  { %1684 = vmatprep.subr.bf16.mxu0 %v2352_v3  ;;  %1696 = vmatprep.subr.bf16.mxu1 %v2352_v3 }
  0x1e   :  { %478 = vperm.xlu0 %1756, %v86_v4   ;;  %534 = vperm.xlu1 %1757, %v70_v10  }
  0x1f   :  { %1686 = vmatpush3.bf16.msra.mxu0 %v1936_v29  ;;  %1698 = vmatpush3.bf16.msra.mxu1 %v1949_v38  ;;  %v659_v29 = vld [vmem:[%s2346_s8 + $0x8] sm:$0xff]  ;;  %v668_v38 = vmin.f32 %v660_v28, 0.0 }
  0x20   :  { %1687 = vmatprep.subr.bf16.mxu0 %v2352_v3  ;;  %1699 = vmatprep.subr.bf16.mxu1 %v2352_v3  ;;  %v663_v31 = vmax.f32 %v659_v29, 0.0  ;;  %v667_v36 = vmin.f32 %v659_v29, 0.0 }
  0x21   :  { %v2048_v42 = vpack.c.bf16 %v669_v39, %v668_v38 }
  0x22   :  { %483 = vperm.xlu0 %1756, %v87_v11   ;;  %539 = vperm.xlu1 %1757, %v71_v17   ;;  %v2039_v37 = vpack.c.bf16 %v663_v31, %v662_v30  ;;  %v2041_v40 = vpack.c.bf16 %v667_v36, %v666_v34  ;;  %v406_v11 = vmin.f32 %v405_v60, 1.0  ;;  %v2095_v17 = vsub.s32 0, %v2081_v5 }
  0x23   :  { %1689 = vmatpush3.bf16.msra.mxu0 %v1664_v49  ;;  %1701 = vmatpush3.bf16.msra.mxu1 %v1676_v50 }
  0x24   :  { %1708 = vmatprep.subr.bf16.mxu1 %v2352_v3  ;;  %1702 = vmatprep.subr.bf16.mxu0 %v2352_v3 }
  0x26   :  { %1557 = vmatmul.mubr.msk.f32.vlgmr.msra.gmra.mrb[2].mxu0 %vm115_vm1, %v1970_v54  ;;  %1576 = vmatmul.mubr.msk.f32.vlgmr.msra.gmra.mrb[2].mxu1 %vm115_vm1, %v1968_v53 }
  0x27   :  { %488 = vperm.xlu0 %1756, %v88_v18   ;;  %1597 = vmatprep.mubr.msk.f32.mxu1 %vm1785_vm0, %v2354_v15 }
  0x28   :  { %1586 = vmatprep.mubr.msk.f32.mxu0 %vm1785_vm0, %v2354_v15  ;;  %544 = vperm.xlu1 %1757, %v72_v22  }
  0x29   :  { %1710 = vmatpush3.bf16.msra.mxu1 %v2039_v37  ;;  %1704 = vmatpush3.bf16.msra.mxu0 %v2041_v40 }
  0x2a   :  { %1711 = vmatprep.subr.bf16.mxu1 %v2352_v3  ;;  %1705 = vmatprep.subr.bf16.mxu0 %v2352_v3 }
  0x2b   :  { %493 = vperm.xlu0 %1756, %v89_v23  }
  0x2c   :  { %549 = vperm.xlu1 %1757, %v73_v25  }
  0x2d   :  { %1713 = vmatpush3.bf16.msra.mxu1 %v2044_v41  ;;  %1707 = vmatpush3.bf16.msra.mxu0 %v2048_v42 }
  0x2e   :  { %1720 = vmatprep.subr.bf16.mxu1 %v2352_v3  ;;  %1714 = vmatprep.subr.bf16.mxu0 %v2352_v3 }
  0x8c   :  { %v2055_v43 = vpop.permute.xlu0 %458  ;;  %v2057_v49 = vpop.permute.xlu1 %514 }
  0x90   :  { %v2059_v50 = vpop.permute.xlu0 %463  ;;  %v2061_v51 = vpop.permute.xlu1 %519 }
  0x94   :  { %v2063_v52 = vpop.permute.xlu0 %468  ;;  %v2073_v58 = vpop.permute.xlu1 %524 }
  0x99   :  { %v2075_v59 = vpop.permute.xlu0 %473  ;;  %v2086_v12 = vpop.permute.xlu1 %529 }
  0x9d   :  { %v2088_v13 = vpop.permute.xlu0 %478  ;;  %v2114_v24 = vpop.permute.xlu1 %534 }
  0xa1   :  { %v2116_v25 = vpop.permute.xlu0 %483 }
  0xa6   :  { %v2141_v60 = vpop.permute.xlu0 %488 }
  0xe9   :  { %v185_v44 = vpop.f32.mrb[0].mxu0  ;;  %v258_v45 = vpop.f32.mrb[0].mxu1 }
  0xea   :  { %v259_v46 = vadd.f32 %v258_v45, %v185_v44  ;;  %v1520_v47 = vpop.f32.mrb[1].mxu0  ;;  %v1539_v48 = vpop.f32.mrb[1].mxu1 }
  0xeb   :  { %v2137_v45 = vpop.permute.xlu1 %539 }
  0xec   :  { %v2078_v63 = vadd.f32 %v259_v46, %v2071_v57 }
  0xee   :  { %vm411_vm3 = vcmp.lt.f32.partialorder %v2078_v63, 0.0  ;;  %vm409_vm5 = vcmp.ge.f32.partialorder %v2078_v63, 0.0  ;;  %v421_v38 = vsub.f32 0.0, %v2078_v63 }
  0xf9   :  { %v329_v61 = vpop.f32.mrb[2].mxu0  ;;  %v399_v62 = vpop.f32.mrb[2].mxu1 }
  0xfa   :  { %v400_v4 = vadd.f32 %v399_v62, %v329_v61  ;;  %v1558_v6 = vpop.f32.mrb[3].mxu0  ;;  %v1577_v7 = vpop.f32.mrb[3].mxu1 }
  0xfc   :  { %v2084_v10 = vadd.f32 %v400_v4, %v2071_v57 }
  0xfe   :  { %vm410_vm2 = vcmp.gt.f32.partialorder %v2084_v10, 0.0  ;;  %v413_v16 = vsub.f32 %v2084_v10, %v2078_v63 }
  0xff   :  { %vm2097_vm4 = vmand %vm410_vm2, %vm411_vm3 }
 0x100   :  { %v414_v19 = vsel %vm2097_vm4, %v413_v16, 1.0  ;;  %v417_v21 = vsel %vm2097_vm4, %v406_v11, 0.0 }
 0x101   :  { %1758 = vrcp.f32 %v414_v19  ;;  %v2108_v22 = vsel %vm409_vm5, 1.0, %v417_v21 }
 0x102   :  { %v2112_v23 = vrot.slane %v2108_v22, %v2095_v17 }
 0x104   :  { %v446_v27 = vmul.f32 %v2112_v23, %v1908_v20  ;;  %v440_v29 = vmul.f32 %v2112_v23, %v1858_v0  ;;  %v441_v28 = vmul.f32 %v2112_v23, %v1863_v1  ;;  %v442_v30 = vmul.f32 %v2112_v23, %v1868_v2 }
 0x105   :  { %v443_v31 = vmul.f32 %v2112_v23, %v1879_v8  ;;  %v444_v32 = vmul.f32 %v2112_v23, %v1884_v9  ;;  %v445_v36 = vmul.f32 %v2112_v23, %v1893_v14  ;;  %v2135_v44 = vmul.f32 %v2112_v23, %v1924_v26 }
 0x106   :  { %v593_v33 = vmax.f32 %v440_v29, 0.0  ;;  %v594_v34 = vmax.f32 %v441_v28, 0.0  ;;  %v615_v35 = vmin.f32 %v446_v27, 0.0  ;;  %v595_v39 = vmax.f32 %v442_v30, 0.0 }
 0x107   :  { %v596_v46 = vmax.f32 %v443_v31, 0.0  ;;  %v597_v47 = vmax.f32 %v444_v32, 0.0  ;;  %v609_v61 = vmin.f32 %v440_v29, 0.0  ;;  %v610_v62 = vmin.f32 %v441_v28, 0.0 }
 0x108   :  { %v601_v48 = vmul.f32 %v593_v33, %v2057_v49  ;;  %v602_v55 = vmul.f32 %v594_v34, %v2061_v51  ;;  %v611_v4 = vmin.f32 %v442_v30, 0.0  ;;  %v612_v6 = vmin.f32 %v443_v31, 0.0 }
 0x109   :  { %v2144_v11 = vmul.f32 %v615_v35, %v2141_v60  ;;  %v598_v16 = vmax.f32 %v445_v36, 0.0  ;;  %v599_v19 = vmax.f32 %v446_v27, 0.0  ;;  %v613_v21 = vmin.f32 %v444_v32, 0.0 }
 0x10a   :  { %v614_v3 = vmin.f32 %v445_v36, 0.0  ;;  %v617_v33 = vmul.f32 %v609_v61, %v2055_v43  ;;  %v618_v34 = vmul.f32 %v610_v62, %v2059_v50  ;;  %v603_v15 = vmul.f32 %v595_v39, %v2073_v58  ;;  %v545_v61 = vpop.permute.xlu1 %544 }
 0x10b   :  { %v1759_v7 = vpop.eup %1758  ;;  %v604_v29 = vmul.f32 %v596_v46, %v2086_v12  ;;  %v619_v28 = vmul.f32 %v611_v4, %v2063_v52  ;;  %v620_v30 = vmul.f32 %v612_v6, %v2075_v59  ;;  %v605_v62 = vmul.f32 %v597_v47, %v2114_v24 }
 0x10c   :  { %v416_v56 = vmul.f32 %v1759_v7, %v2084_v10  ;;  %v625_v32 = vadd.f32 %v617_v33, %v601_v48  ;;  %v626_v35 = vadd.f32 %v618_v34, %v602_v55  ;;  %v606_v39 = vmul.f32 %v598_v16, %v2137_v45 }
 0x10d   :  { %v621_v46 = vmul.f32 %v613_v21, %v2088_v13  ;;  %v622_v48 = vmul.f32 %v614_v3, %v2116_v25  ;;  %v627_v55 = vadd.f32 %v619_v28, %v603_v15  ;;  %v628_v6 = vadd.f32 %v620_v30, %v604_v29 }
 0x10e   :  { %v419_v31 = vsel %vm2097_vm4, %v416_v56, 0.0  ;;  %v422_v27 = vmul.f32 %v421_v38, %v416_v56  ;;  %v607_v38 = vmul.f32 %v599_v19, %v545_v61  ;;  %v633_v7 = vsel %vm568_vm6, %v625_v32, 0.0 }
 0x10f   :  { %v2157_v36 = vsel %vm409_vm5, 1.0, %v419_v31  ;;  %v634_v47 = vsel %vm568_vm6, %v626_v35, 0.0  ;;  %v629_v34 = vadd.f32 %v621_v46, %v605_v62 }
 0x110   :  { %v2164_v4 = vsel %vm2097_vm4, %v422_v27, 0.0  ;;  %v2168_v56 = vrot.slane %v2157_v36, %v2095_v17  ;;  %v636_v27 = vsel %vm568_vm6, %v627_v55, 0.0 }
 0x112   :  { %v434_v16 = vmul.f32 %v2168_v56, %v1908_v20  ;;  %v428_v18 = vmul.f32 %v2168_v56, %v1858_v0  ;;  %v429_v21 = vmul.f32 %v2168_v56, %v1863_v1  ;;  %v430_v19 = vmul.f32 %v2168_v56, %v1868_v2 }
 0x113   :  { %v431_v3 = vmul.f32 %v2168_v56, %v1879_v8  ;;  %v432_v15 = vmul.f32 %v2168_v56, %v1884_v9  ;;  %v433_v33 = vmul.f32 %v2168_v56, %v1893_v14  ;;  %v630_v0 = vadd.f32 %v622_v48, %v606_v39 }
 0x114   :  { %v448_v20 = vmax.f32 %v428_v18, 0.0  ;;  %v449_v29 = vmax.f32 %v429_v21, 0.0  ;;  %v450_v28 = vmax.f32 %v430_v19, 0.0  ;;  %v504_v31 = vmin.f32 %v428_v18, 0.0 }
 0x115   :  { %v451_v30 = vmax.f32 %v431_v3, 0.0  ;;  %v635_v1 = vadd.f32 %v634_v47, %v633_v7  ;;  %v454_v2 = vmax.f32 %v434_v16, 0.0  ;;  %v452_v32 = vmax.f32 %v432_v15, 0.0 }
 0x116   :  { %v453_v35 = vmax.f32 %v433_v33, 0.0  ;;  %v638_v8 = vsel %vm568_vm6, %v628_v6, 0.0  ;;  %v496_v9 = vmul.f32 %v2055_v43, %v448_v20  ;;  %v497_v5 = vmul.f32 %v2059_v50, %v449_v29 }
 0x117   :  { %v498_v14 = vmul.f32 %v2063_v52, %v450_v28  ;;  %v505_v62 = vmin.f32 %v429_v21, 0.0  ;;  %v499_v46 = vmul.f32 %v2075_v59, %v451_v30  ;;  %v506_v39 = vmin.f32 %v430_v19, 0.0 }
 0x118   :  { %v507_v48 = vmin.f32 %v431_v3, 0.0  ;;  %v508_v18 = vmin.f32 %v432_v15, 0.0  ;;  %v509_v7 = vmin.f32 %v433_v33, 0.0  ;;  %v552_v55 = vmul.f32 %v2057_v49, %v504_v31 }
 0x119   :  { %v553_v47 = vmul.f32 %v2061_v51, %v505_v62  ;;  %v637_v53 = vadd.f32 %v636_v27, %v635_v1  ;;  %v500_v6 = vmul.f32 %v2088_v13, %v452_v32  ;;  %v510_v54 = vmin.f32 %v434_v16, 0.0 }
 0x11a   :  { %v554_v43 = vmul.f32 %v2073_v58, %v506_v39  ;;  %v555_v50 = vmul.f32 %v2086_v12, %v507_v48  ;;  %v556_v52 = vmul.f32 %v2114_v24, %v508_v18  ;;  %v560_v21 = vadd.f32 %v552_v55, %v496_v9 }
 0x11b   :  { %v561_v59 = vadd.f32 %v553_v47, %v497_v5  ;;  %v639_v19 = vadd.f32 %v638_v8, %v637_v53  ;;  %v501_v3 = vmul.f32 %v2116_v25, %v453_v35  ;;  %v631_v49 = vadd.f32 %v2144_v11, %v607_v38  ;;  %v494_v38 = vpop.permute.xlu0 %493 }
 0x11c   :  { %v562_v15 = vadd.f32 %v554_v43, %v498_v14  ;;  %v616_v51 = vmin.f32 %v2135_v44, 0.0  ;;  %v557_v33 = vmul.f32 %v2137_v45, %v509_v7  ;;  %v563_v13 = vadd.f32 %v555_v50, %v499_v46 }
 0x11d   :  { %v569_v16 = vsel %vm568_vm6, %v560_v21, 0.0  ;;  %v570_v58 = vsel %vm568_vm6, %v561_v59, 0.0  ;;  %v502_v12 = vmul.f32 %v2141_v60, %v454_v2  ;;  %v558_v24 = vmul.f32 %v545_v61, %v510_v54 }
 0x11e   :  { %v571_v20 = vadd.f32 %v570_v58, %v569_v16  ;;  %v640_v53 = vsel %vm568_vm6, %v629_v34, 0.0  ;;  %v564_v5 = vadd.f32 %v556_v52, %v500_v6  ;;  %v572_v25 = vsel %vm568_vm6, %v562_v15, 0.0  ;;  %v550_v34 = vpop.permute.xlu1 %549 }
 0x11f   :  { %v641_v29 = vadd.f32 %v640_v53, %v639_v19  ;;  %v642_v11 = vsel %vm568_vm6, %v630_v0, 0.0  ;;  %v435_v45 = vmul.f32 %v2168_v56, %v1924_v26  ;;  %v624_v30 = vmul.f32 %v616_v51, %v494_v38 }
 0x120   :  { %v573_v28 = vadd.f32 %v572_v25, %v571_v20  ;;  %v600_v31 = vmax.f32 %v2135_v44, 0.0  ;;  %v565_v1 = vadd.f32 %v557_v33, %v501_v3  ;;  %v574_v54 = vsel %vm568_vm6, %v563_v13, 0.0  ;;  %v1121_v25 = vld [vmem:[%s2345_s7] sm:$0xff] }
 0x121   :  { %v643_v60 = vadd.f32 %v642_v11, %v641_v29  ;;  %v644_v61 = vsel %vm568_vm6, %v631_v49, 0.0  ;;  %v455_v2 = vmax.f32 %v435_v45, 0.0  ;;  %v511_v32 = vmin.f32 %v435_v45, 0.0  ;;  %v1122_v29 = vld [vmem:[%s2345_s7 + $0x8] sm:$0x3] }
 0x122   :  { %v575_v27 = vadd.f32 %v574_v54, %v573_v28  ;;  %v608_v35 = vmul.f32 %v600_v31, %v550_v34  ;;  %v566_v0 = vadd.f32 %v558_v24, %v502_v12  ;;  %v576_v8 = vsel %vm568_vm6, %v564_v5, 0.0  ;;  %v959_v31 = vld [vmem:[%s2349_s11] sm:$0xff]  ;;  %v960_v54 = vld [vmem:[%s2349_s11 + $0x8] sm:$0x3] }
 0x123   :  { %v645_v9 = vadd.f32 %v644_v61, %v643_v60  ;;  %v503_v26 = vmul.f32 %v494_v38, %v455_v2  ;;  %v559_v62 = vmul.f32 %v550_v34, %v511_v32  ;;  %v578_v44 = vsel %vm568_vm6, %v565_v1, 0.0  ;;  %v1125_v61 = vld [vmem:[%s2341_s3 + $0x10] sm:$0xff]  ;;  %v1126_v34 = vld [vmem:[%s2341_s3 + $0x18] sm:$0xff] }
 0x124   :  { %v577_v14 = vadd.f32 %v576_v8, %v575_v27  ;;  %v632_v46 = vadd.f32 %v624_v30, %v608_v35  ;;  %v580_v7 = vsel %vm568_vm6, %v566_v0, 0.0  ;;  %v654_v13 = vmul.f32 %v2108_v22, %v2071_v57 }
 0x125   :  { %v567_v48 = vadd.f32 %v559_v62, %v503_v26  ;;  %v407_v58 = vmax.f32 %v2078_v63, 0.0  ;;  %v590_v24 = vmul.f32 %v2157_v36, %v2071_v57  ;;  %v408_v63 = vmax.f32 %v2084_v10, 0.0  ;;  %v1123_v10 = vld [vmem:[%s2341_s3] sm:$0xff] }
 0x126   :  { %v579_v39 = vadd.f32 %v578_v44, %v577_v14  ;;  %v646_v18 = vsel %vm568_vm6, %v632_v46, 0.0  ;;  %v2365_v22 = vmov 0.0   ;;  %v2366_v11 = vmov 0.0|0.0  }
 0x127   :  { %v647_v55 = vadd.f32 %v646_v18, %v645_v9  ;;  %v582_v6 = vsel %vm568_vm6, %v567_v48, 0.0  ;;  %v1734_v38 = vpack.c.bf16 %v1122_v29, %v1121_v25  ;;  %v963_v60 = vmin.f32 %v959_v31, 0.0 }
 0x128   :  { %v581_v47 = vadd.f32 %v580_v7, %v579_v39  ;;  %v964_v2 = vmin.f32 %v960_v54, 0.0  ;;  %v1744_v32 = vpack.c.bf16 %v1126_v34, %v1125_v61  ;;  %v961_v14 = vmax.f32 %v959_v31, 0.0 }
 0x129   :  { %v648_v43 = vrot.slane %v647_v55, 4  ;;  %v962_v26 = vmax.f32 %v960_v54, 0.0 }
 0x12a   :  { %v583_v50 = vadd.f32 %v582_v6, %v581_v47  ;;  %v1727_v8 = vpack.c.bf16 %v964_v2, %v963_v60 }
 0x12b   :  { %v649_v52 = vadd.f32 %v648_v43, %v647_v55  ;;  %v1731_v62 = vpack.c.bf16 %v962_v26, %v961_v14  ;;  %v2372_v26 = vlaneseq }
 0x12c   :  { %v584_v21 = vrot.slane %v583_v50, 4 }
 0x12d   :  { %v650_v59 = vrot.slane %v649_v52, 2 }
 0x12e   :  { %v585_v19 = vadd.f32 %v584_v21, %v583_v50  ;;  %v1239_v21 = vrot.slane %v2164_v4, %v2095_v17 }
 0x12f   :  { %v651_v3 = vadd.f32 %v650_v59, %v649_v52 }
 0x130   :  { %v586_v15 = vrot.slane %v585_v19, 2 }
 0x131   :  { %v652_v49 = vrot.slane %v651_v3, 1 }
 0x132   :  { %v587_v51 = vadd.f32 %v586_v15, %v585_v19 }
 0x133   :  { %v653_v33 = vadd.f32 %v652_v49, %v651_v3 }
 0x134   :  { %v588_v16 = vrot.slane %v587_v51, 1 }
 0x135   :  { %v655_v12 = vadd.f32 %v654_v13, %v653_v33  ;;  %v1336_v13 = vrot.slane %v2071_v57, %v2095_v17 }
 0x136   :  { %v589_v20 = vadd.f32 %v588_v16, %v587_v51 }
 0x137   :  { %v657_v53 = vmax.f32 %v407_v58, %v655_v12 }
 0x138   :  { %v591_v5 = vadd.f32 %v590_v24, %v589_v20 }
 0x139   :  { %1598 = vmatmul.mubr.msk.f32.vlgmr.msra.gmra.mrb[4].mxu1 %vm568_vm6, %v657_v53 }
 0x13a   :  { %1722 = vmatpush3.bf16.msra.mxu1 %v2039_v37  ;;  %1619 = vmatprep.mubr.msk.f32.mxu1 %vm1785_vm0, %v2365_v22  ;;  %v592_v36 = vadd.f32 %v591_v5, %v2164_v4  ;;  %v1119_v37 = vld [vmem:[%s2348_s10] sm:$0xff] }
 0x13b   :  { %1723 = vmatprep.subr.bf16.mxu1 %v2366_v11 }
 0x13c   :  { %v656_v45 = vmin.f32 %v408_v63, %v592_v36  ;;  %v2369_v63 = vld [vmem:[#allocation7_spill] sm:$0xff]  ;;  %v2370_v36 = vld [vmem:[#allocation6_spill] sm:$0xff] }
 0x13e   :  { %1725 = vmatpush3.bf16.msra.mxu1 %v2044_v41  ;;  %1587 = vmatmul.mubr.msk.f32.vlgmr.msra.gmra.mrb[4].mxu0 %vm568_vm6, %v656_v45  ;;  %v2268_v41 = vld [vmem:[%s2347_s9] sm:$0x1] }
 0x13f   :  { %1736 = vmatprep.subr.msk.bf16.mxu1 %vm2237_vm9, %v1734_v38  ;;  %1716 = vmatpush3.bf16.msra.mxu0 %v2041_v40  ;;  %v1120_v40 = vld [vmem:[%s2348_s10 + $0x8] sm:$0x1]  ;;  %v1215_v30 = vrot.slane %v2268_v41, %v2095_v17 }
 0x140   :  { %1717 = vmatprep.subr.bf16.mxu0 %v2366_v11  ;;  %1608 = vmatprep.mubr.msk.f32.mxu0 %vm1785_vm0, %v2365_v22 }
 0x141   :  { %1620 = vmatmul.mubr.msk.f32.vlgmr.msra.gmra.mrb[6].mxu1 %vm568_vm6, %v656_v45  ;;  %v1217_v27 = vmul.f32 %v1215_v30, %v1119_v37  ;;  %v1218_v35 = vmul.f32 %v1215_v30, %v1120_v40 }
 0x142   :  { %1739 = vmatpush3.bf16.msk.msra.mxu1 %vm2237_vm9, %v1734_v38  ;;  %1640 = vmatprep.mubr.msk.f32.mxu1 %vm965_vm10, %v1119_v37 }
 0x143   :  { %1719 = vmatpush3.bf16.msra.mxu0 %v2048_v42  ;;  %v1124_v42 = vld [vmem:[%s2341_s3 + $0x8] sm:$0xff]  ;;  %v1219_v0 = vsel %vm965_vm10, %v1217_v27, 0.0  ;;  %v1223_v9 = vsel %vm1222_vm11, %v1218_v35, 0.0  ;;  %s1789_s3 = smov [#allocation3]  }
 0x144   :  { %1726 = vmatprep.subr.bf16.mxu0 %v2366_v11  ;;  %v1740_v1 = vpack.c.bf16 %v1124_v42, %v1123_v10  ;;  %1220 = vadd.xlane.f32.xlu0 %v1219_v0  ;;  %s1405_s11 = sshll.u32 %s1789_s3, 4  ;;  %s1406_s11 = int_to_ptr.vmem [resolvable:$true] %s1405_s11 }
 0x145   :  { %1641 = vmatmul.mubr.msk.f32.vlgmr.msra.gmra.mrb[8].mxu1 %vm965_vm10, %v1120_v40  ;;  %1224 = vadd.xlane.f32.xlu1 %v1223_v9  ;;  %v2371_v9 = vld [vmem:[#allocation8_spill] sm:$0xff]  ;;  %s1760_s23 = scalar_lea.vmem %s1406_s11, 16  ;;  %s1764_s24 = scalar_lea.vmem %s1406_s11, 32 }
 0x146   :  { %1609 = vmatmul.mubr.msk.f32.vlgmr.msra.gmra.mrb[6].mxu0 %vm568_vm6, %v657_v53  ;;  %1741 = vmatprep.subr.bf16.mxu1 %v1740_v1  ;;  %v1379_v14 = vadd.s32 8, %v2371_v9  ;;  %p1761_p0 = scmp.ne.s32.totalorder %s1406_s11, %s1760_s23  ;;  %p1765_p1 = scmp.lt.s32.totalorder %s1406_s11, %s1406_s11 }
 0x147   :  { %1626 = vmatprep.mubr.msk.f32.mxu0 %vm1785_vm0, %v2365_v22  ;;  %1743 = vmatpush3.bf16.msra.mxu1 %v1740_v1  ;;  %p1766_p2 = scmp.lt.s32.totalorder %s1764_s24, %s1760_s23 }
 0x148   :  { %1745 = vmatprep.subr.bf16.mxu1 %v1744_v32  ;;  %1729 = vmatpush3.bf16.msk.msra.mxu0 %vm2237_vm9, %v1727_v8 }
 0x149   :  { %1730 = vmatprep.subr.bf16.mxu0 %v2366_v11  ;;  %v1362_v11 = vrot.slane %v2370_v36, %v2095_v17  ;;  %p1767_p3 = por %p1766_p2, %p1765_p1 }
 0x14b   :  { %1747 = vmatpush3.bf16.msra.mxu1 %v1744_v32  ;;  %p1768_p4 = pnand %p1767_p3, %p1761_p0 }
 0x1d2   :  { %v1225_v35 = vpop.xlane.xlu1 %1224 }
 0x20c   :  { %v813_v46 = vpop.f32.mrb[4].mxu1 }
 0x20d   :  { %v1599_v44 = vpop.f32.mrb[5].mxu1 }
 0x211   :  { %v740_v39 = vpop.f32.mrb[4].mxu0 }
 0x212   :  { %v814_v48 = vadd.f32 %v813_v46, %v740_v39  ;;  %v1588_v18 = vpop.f32.mrb[5].mxu0 }
 0x214   :  { %v954_v7 = vpop.f32.mrb[6].mxu1  ;;  %v817_v25 = vadd.f32 %v814_v48, %v2268_v41 }
 0x215   :  { %v1621_v55 = vpop.f32.mrb[7].mxu1 }
 0x218   :  { %v1642_v47 = vpop.f32.mrb[8].mxu1 }
 0x219   :  { %v1227_v6 = vmax.f32 %v1642_v47, 0.0  ;;  %v1229_v43 = vmin.f32 %v1642_v47, 0.0  ;;  %v1202_v50 = vpop.f32.mrb[9].mxu1  ;;  %v884_v52 = vpop.f32.mrb[6].mxu0 }
 0x21a   :  { %v1226_v59 = vmax.f32 %v1202_v50, 0.0  ;;  %v1228_v19 = vmin.f32 %v1202_v50, 0.0  ;;  %v955_v3 = vadd.f32 %v954_v7, %v884_v52  ;;  %v1610_v15 = vpop.f32.mrb[7].mxu0 }
 0x21b   :  { %v1231_v49 = vmul.f32 %v1227_v6, %v2112_v23  ;;  %v1233_v51 = vmul.f32 %v1229_v43, %v2168_v56  ;;  %v1241_v33 = vmul.f32 %v1239_v21, %v1229_v43 }
 0x21c   :  { %v1230_v16 = vmul.f32 %v1226_v59, %v2112_v23  ;;  %v1232_v58 = vmul.f32 %v1228_v19, %v2168_v56  ;;  %v958_v12 = vadd.f32 %v955_v3, %v2268_v41  ;;  %v1240_v4 = vmul.f32 %v1239_v21, %v1228_v19 }
 0x21d   :  { %v1235_v24 = vadd.f32 %v1233_v51, %v1231_v49  ;;  %v1246_v20 = vsel %vm1245_vm12, %v1241_v33, 0.0 }
 0x21e   :  { %v1234_v53 = vadd.f32 %v1232_v58, %v1230_v16  ;;  %1247 = vadd.xlane.f32.xlu0 %v1246_v20  ;;  %1627 = vmatmul.mubr.msk.f32.vlgmr.msra.gmra.mrb[8].mxu0 %vm965_vm10, %v958_v12  ;;  %v1242_v23 = vsel %vm568_vm6, %v1240_v4, 0.0 }
 0x21f   :  { %1733 = vmatpush3.bf16.msk.msra.mxu0 %vm2237_vm9, %v1731_v62  ;;  %1633 = vmatprep.mubr.msk.f32.mxu0 %vm1785_vm0, %v2365_v22  ;;  %v1339_v56 = vmul.f32 %v1336_v13, %v1235_v24  ;;  %v1353_v22 = vrot.slane %v2369_v63, %v2095_v17  ;;  %v1221_v17 = vpop.xlane.xlu0 %1220  ;;  %v1381_v62 = vand.u32 127, %v2372_v26  ;;  %vm1388_vm0 = vcmask 65536  }
 0x220   :  { %1651 = vmatprep.mubr.msk.f32.mxu1 %vm568_vm6, %v1234_v53  ;;  %v1338_v57 = vmul.f32 %v1336_v13, %v1234_v53 }
 0x221   :  { %1652 = vmatmul.mubr.msk.f32.vlgmr.msra.gmra.mrb[10].mxu1 %vm568_vm6, %v1235_v24  ;;  %v1343_v29 = vsel %vm1245_vm12, %v1339_v56, 0.0  ;;  %vm1383_vm14 = vcmp.eq.s32.totalorder %v1379_v14, %v1381_v62  ;;  %vm1382_vm15 = vcmp.eq.s32.totalorder %v2371_v9, %v1381_v62 }
 0x222   :  { %1243 = vadd.xlane.f32.xlu0 %v1242_v23  ;;  %v1340_v5 = vsel %vm568_vm6, %v1338_v57, 0.0 }
 0x223   :  { %1341 = vadd.xlane.f32.xlu1 %v1340_v5 }
 0x226   :  { %1344 = vadd.xlane.f32.xlu0 %v1343_v29  ;;  %1634 = vmatmul.mubr.msk.f32.vlgmr.msra.gmra.mrb[8].mxu0 %vm965_vm10, %v817_v25 }
 0x2ab   :  { %v1248_v2 = vpop.xlane.xlu0 %1247 }
 0x2ac   :  { %v1250_v46 = vadd.f32 %v1248_v2, %v1225_v35 }
 0x2af   :  { %v1244_v32 = vpop.xlane.xlu0 %1243 }
 0x2b0   :  { %v1249_v0 = vadd.f32 %v1244_v32, %v1221_v17  ;;  %v1342_v44 = vpop.xlane.xlu1 %1341 }
 0x2b2   :  { %v1346_v48 = vadd.f32 %v1342_v44, %v1249_v0 }
 0x2b3   :  { %v1345_v8 = vpop.xlane.xlu0 %1344 }
 0x2b4   :  { %v1347_v39 = vadd.f32 %v1345_v8, %v1250_v46 }
 0x2f4   :  { %v1653_v38 = vpop.f32.mrb[10].mxu1 }
 0x2f5   :  { %v1349_v28 = vmax.f32 %v1653_v38, 0.0  ;;  %v1358_v45 = vmin.f32 %v1653_v38, 0.0  ;;  %v1323_v37 = vpop.f32.mrb[11].mxu1 }
 0x2f6   :  { %v1348_v40 = vmax.f32 %v1323_v37, 0.0  ;;  %v1357_v10 = vmin.f32 %v1323_v37, 0.0 }
 0x2f7   :  { %v1356_v42 = vmul.f32 %v1353_v22, %v1349_v28  ;;  %v1365_v30 = vmul.f32 %v1362_v11, %v1358_v45 }
 0x2f8   :  { %v1355_v41 = vmul.f32 %v1353_v22, %v1348_v40  ;;  %v1364_v31 = vmul.f32 %v1362_v11, %v1357_v10 }
 0x2f9   :  { %v1115_v1 = vpop.f32.mrb[8].mxu0  ;;  %v1367_v54 = vadd.f32 %v1365_v30, %v1356_v42 }
 0x2fa   :  { %v1635_v60 = vpop.f32.mrb[9].mxu0  ;;  %v1366_v61 = vadd.f32 %v1364_v31, %v1355_v41 }
 0x2fb   :  { %v1372_v34 = vsel %vm1371_vm13, %v1367_v54, 0.0 }
 0x2fc   :  { %1373 = vadd.xlane.f32.xlu0 %v1372_v34  ;;  %v1368_v27 = vsel %vm115_vm1, %v1366_v61, 0.0  ;;  %vm1386_vm1 = vcmask 72704  }
 0x2fd   :  { %1369 = vadd.xlane.f32.xlu1 %v1368_v27 }
 0x389   :  { %v1374_v18 = vpop.xlane.xlu0 %1373 }
 0x38a   :  { %v1376_v7 = vadd.f32 %v1374_v18, %v1347_v39  ;;  %v1370_v55 = vpop.xlane.xlu1 %1369 }
 0x38b   :  { %v1375_v47 = vadd.f32 %v1370_v55, %v1346_v48 }
 0x38c   :  { %v1385_v6 = vsel %vm1383_vm14, %v1376_v7, 0.0 }
 0x38d   :  { %v1384_v43 = vsel %vm1382_vm15, %v1375_v47, 0.0  ;;  %v1389_v50 = vsel %vm1388_vm0, %v1385_v6, 0.0 }
 0x38e   :  { %v1387_v52 = vsel %vm1386_vm1, %v1384_v43, 0.0 }
 0x38f   :  { %v1390_v21 = vadd.f32 %v1389_v50, %v1387_v52 }
 0x391   :  { %v1391_v59 = vrot.slane %v1390_v21, 4 }
 0x393   :  { %v1392_v19 = vadd.f32 %v1391_v59, %v1390_v21 }
 0x395   :  { %v1393_v3 = vrot.slane %v1392_v19, 2 }
 0x397   :  { %v1394_v15 = vadd.f32 %v1393_v3, %v1392_v19 }
 0x399   :  { %v1395_v49 = vrot.slane %v1394_v15, 1 }
 0x39b   :  { %v1396_v51 = vadd.f32 %v1395_v49, %v1394_v15 }
 0x39d   :  { %v1397_v33 = vmax.f32 %v1115_v1, %v1396_v51 }
 0x39f   :  { %1398 = vst.msk [vmem:[#allocation3] sm:$0x1] %vm1388_vm0, %v1397_v33 }
 0x3a0   :  { %1771 = shalt.err (!%p1768_p4)
}
 0x3a1   :  { %s1772_s4 = scalar_lea.hbm %s2350_s12, 16 }
 0x3a2   :  { %p1773_p5 = scmp.ne.s32.totalorder %s2350_s12, %s1772_s4  ;;  %p1776_p6 = scmp.lt.u32.totalorder %s1772_s4, %s2350_s12 }
 0x3a4   :  { %p1778_p7 = pnand %p1776_p6, %p1773_p5 }
 0x3a6   :  { %1781 = shalt.err (!%p1778_p7)
}
 0x3a7   :  { %1408 = dma.vmem_to_hbm [thread:$0]  %s1406_s11, 16, %s2350_s12, [#allocation4]  }
 0x3a8   :  { %1782 = dma.done.wait [#allocation4], 16  }
 0x3a9   :  { %1783 = vsyncadd [#allocation4], 4294967280 }
 0x3aa   :  { %1412 = vsyncpa [#allocation4], 1 }

</bundles_post_ra>
